<compile_context>
chip_gen: v5e
topology: v5e:2x2
jax: 0.10.0
libtpu: 0.0.40
codegen_flags: <defaults>
</compile_context>

<pallas_src>
import functools
import math

import jax
import jax.numpy as jnp
from jax import lax
from jax.experimental import pallas as pl
from jax.experimental.pallas import tpu as pltpu

MXU_DTYPE = jnp.bfloat16  # MXU operand dtype; accumulation stays float32.


# ----------------------------------------------------------------------------
# Fused Pallas kernels (one per sub-network, grid over batch)
# ----------------------------------------------------------------------------
def _resnet_fused_kernel(p_ref, cw_ref, cb_ref, pw_ref, pb_ref, o_ref):
    """conv-matmul + ReLU + global average pool + projection for one image."""
    patches = p_ref[0]                                        # (HW, Kp) f32
    conv = jnp.dot(patches.astype(MXU_DTYPE), cw_ref[...],
                   preferred_element_type=jnp.float32)        # (HW, Cc)
    conv = jnp.maximum(conv + cb_ref[...], 0.0)               # ReLU (f32 VPU)
    hw = conv.shape[0]
    pooled = jnp.sum(conv, axis=0, keepdims=True) * (1.0 / hw)  # (1, Cc)
    out = jnp.dot(pooled.astype(MXU_DTYPE), pw_ref[...],
                  preferred_element_type=jnp.float32) + pb_ref[...]
    o_ref[0] = out.astype(o_ref.dtype)                        # (1, Nout) lane-dense


def _bert_fused_kernel(x_ref, m_ref, wq_ref, wk_ref, wv_ref, wo_ref,
                       w1_ref, b1_ref, w2_ref, b2_ref, pw_ref, pb_ref,
                       o_ref, *, scale):
    """self-attn + residual + GELU FFN + residual + masked pool + projection."""
    x = x_ref[0]                                              # (S, H) f32
    m = m_ref[0]                                              # (1, S) key mask
    xb = x.astype(MXU_DTYPE)

    q = jnp.dot(xb, wq_ref[...], preferred_element_type=jnp.float32)
    k = jnp.dot(xb, wk_ref[...], preferred_element_type=jnp.float32)
    v = jnp.dot(xb, wv_ref[...], preferred_element_type=jnp.float32)

    # scores: contract the H axis of both operands (no explicit k.T transpose)
    s = lax.dot_general(q.astype(MXU_DTYPE), k.astype(MXU_DTYPE),
                        (((1,), (1,)), ((), ())),
                        preferred_element_type=jnp.float32) * scale   # (S, S)
    s = s + (1.0 - m) * (-1e9)                                # mask padded keys
    s_max = jnp.max(s, axis=-1, keepdims=True)
    e = jnp.exp(s - s_max)
    p = e * pl.reciprocal(jnp.sum(e, axis=-1, keepdims=True), approx=True)

    av = jnp.dot(p.astype(MXU_DTYPE), v.astype(MXU_DTYPE),
                 preferred_element_type=jnp.float32)          # (S, H)
    attn = jnp.dot(av.astype(MXU_DTYPE), wo_ref[...],
                   preferred_element_type=jnp.float32)
    x1 = x + attn                                             # residual (f32)

    h = jax.nn.gelu(jnp.dot(x1.astype(MXU_DTYPE), w1_ref[...],
                            preferred_element_type=jnp.float32) + b1_ref[...])
    y = jnp.dot(h.astype(MXU_DTYPE), w2_ref[...],
                preferred_element_type=jnp.float32) + b2_ref[...]
    x2 = x1 + y                                               # residual (f32)

    # masked mean pool as a (1,S)@(S,H) matmul (avoids any (S,1) relayout)
    summed = jnp.dot(m, x2, preferred_element_type=jnp.float32)   # (1, H)
    cnt = jnp.maximum(jnp.sum(m, axis=-1, keepdims=True), 1.0)    # (1, 1)
    pooled = summed * pl.reciprocal(cnt, approx=True)

    out = jnp.dot(pooled.astype(MXU_DTYPE), pw_ref[...],
                  preferred_element_type=jnp.float32) + pb_ref[...]
    o_ref[0] = out.astype(o_ref.dtype)                        # (1, Nout) lane-dense


# ----------------------------------------------------------------------------
# Wrappers (pallas_call plumbing)
# ----------------------------------------------------------------------------
def _im2col_3x3_same(x_nhwc):
    B, H, W, C = x_nhwc.shape
    xp = jnp.pad(x_nhwc, ((0, 0), (1, 1), (1, 1), (0, 0)))
    cols = []
    for di in range(3):
        for dj in range(3):
            cols.append(xp[:, di:di + H, dj:dj + W, :])
    patches = jnp.stack(cols, axis=-2)                        # (B, H, W, 9, C)
    return patches.reshape(B, H * W, 9 * C)


def resnet_forward(img_nchw, p):
    # NCHW (PyTorch) -> NHWC; im2col stays in plain-JAX glue (tiny here).
    x = jnp.transpose(img_nchw, (0, 2, 3, 1)).astype(jnp.float32)
    B, H, W, C = x.shape
    patches = _im2col_3x3_same(x)                             # (B, HW, 9*C)
    K = patches.shape[-1]
    Kp, Cc = p["conv_w"].shape                                # K padded to mult of 8
    patches = jnp.pad(patches, ((0, 0), (0, 0), (0, Kp - K)))
    HW = H * W
    Nout = p["cnn_proj_w"].shape[1]

    out = pl.pallas_call(
        _resnet_fused_kernel,
        out_shape=jax.ShapeDtypeStruct((B, 1, Nout), jnp.float32),
        grid=(B,),
        in_specs=[
            pl.BlockSpec((1, HW, Kp), lambda b: (b, 0, 0)),
            pl.BlockSpec((Kp, Cc), lambda b: (0, 0)),
            pl.BlockSpec((1, Cc), lambda b: (0, 0)),
            pl.BlockSpec((Cc, Nout), lambda b: (0, 0)),
            pl.BlockSpec((1, Nout), lambda b: (0, 0)),
        ],
        out_specs=pl.BlockSpec((1, 1, Nout), lambda b: (b, 0, 0)),
        compiler_params=pltpu.CompilerParams(
            dimension_semantics=("parallel",)),
    )(patches, p["conv_w"], p["conv_b"], p["cnn_proj_w"], p["cnn_proj_b"])
    return out.reshape(B, Nout)


def bert_forward(txt3, p):
    input_id, input_mask, segment_id = txt3
    B, S = input_id.shape
    # Embedding lookups (gather) stay in plain JAX glue.
    tok = jnp.take(p["tok_emb"], input_id, axis=0)
    seg = jnp.take(p["seg_emb"], segment_id, axis=0)
    pos = p["pos_emb"][None, :S, :]
    x = (tok + seg + pos).astype(jnp.float32)                 # (B, S, H)
    H = x.shape[-1]
    F = p["ffn_w1"].shape[1]
    Nout = p["bert_proj_w"].shape[1]
    mask = input_mask.astype(jnp.float32).reshape(B, 1, S)    # lane width = S

    kern = functools.partial(_bert_fused_kernel, scale=1.0 / math.sqrt(H))
    out = pl.pallas_call(
        kern,
        out_shape=jax.ShapeDtypeStruct((B, 1, Nout), jnp.float32),
        grid=(B,),
        in_specs=[
            pl.BlockSpec((1, S, H), lambda b: (b, 0, 0)),
            pl.BlockSpec((1, 1, S), lambda b: (b, 0, 0)),
            pl.BlockSpec((H, H), lambda b: (0, 0)),
            pl.BlockSpec((H, H), lambda b: (0, 0)),
            pl.BlockSpec((H, H), lambda b: (0, 0)),
            pl.BlockSpec((H, H), lambda b: (0, 0)),
            pl.BlockSpec((H, F), lambda b: (0, 0)),
            pl.BlockSpec((1, F), lambda b: (0, 0)),
            pl.BlockSpec((F, H), lambda b: (0, 0)),
            pl.BlockSpec((1, H), lambda b: (0, 0)),
            pl.BlockSpec((H, Nout), lambda b: (0, 0)),
            pl.BlockSpec((1, Nout), lambda b: (0, 0)),
        ],
        out_specs=pl.BlockSpec((1, 1, Nout), lambda b: (b, 0, 0)),
        compiler_params=pltpu.CompilerParams(
            dimension_semantics=("parallel",)),
    )(x, mask, p["wq"], p["wk"], p["wv"], p["wo"],
      p["ffn_w1"], p["ffn_b1"], p["ffn_w2"], p["ffn_b2"],
      p["bert_proj_w"], p["bert_proj_b"])
    return out.reshape(B, Nout)


# ----------------------------------------------------------------------------
# Parameters and full forward
# ----------------------------------------------------------------------------
def init_params(key, vocab=100, hidden=32, ffn=64, seq=8,
                img_c=3, conv_c=32, cnn_out=128, bert_out=128):
    ks = jax.random.split(key, 12)

    def w(k, shape, scale=0.02, dtype=MXU_DTYPE):
        return (scale * jax.random.normal(k, shape)).astype(dtype)

    k_im2col = 9 * img_c                              # 27
    k_pad = ((k_im2col + 7) // 8) * 8                 # 32: aligned MXU feed
    conv_w = w(ks[0], (k_im2col, conv_c), dtype=jnp.float32)
    conv_w = jnp.pad(conv_w, ((0, k_pad - k_im2col), (0, 0))).astype(MXU_DTYPE)

    return dict(
        conv_w=conv_w,                                # (9*Cin padded, Cc) bf16
        conv_b=jnp.zeros((1, conv_c), jnp.float32),
        cnn_proj_w=w(ks[1], (conv_c, cnn_out)),
        cnn_proj_b=jnp.zeros((1, cnn_out), jnp.float32),
        tok_emb=w(ks[2], (vocab, hidden), dtype=jnp.float32),
        seg_emb=w(ks[3], (2, hidden), dtype=jnp.float32),
        pos_emb=w(ks[4], (seq, hidden), dtype=jnp.float32),
        wq=w(ks[5], (hidden, hidden)),
        wk=w(ks[6], (hidden, hidden)),
        wv=w(ks[7], (hidden, hidden)),
        wo=w(ks[8], (hidden, hidden)),
        ffn_w1=w(ks[9], (hidden, ffn)),
        ffn_b1=jnp.zeros((1, ffn), jnp.float32),
        ffn_w2=w(ks[10], (ffn, hidden)),
        ffn_b2=jnp.zeros((1, hidden), jnp.float32),
        bert_proj_w=w(ks[11], (hidden, bert_out)),
        bert_proj_b=jnp.zeros((1, bert_out), jnp.float32),
    )


def tesam4align_forward(img, txt, p):
    input_id, input_mask, segment_id, ocr_id, ocr_mask = txt
    x1 = resnet_forward(img, p)                                # (B, cnn_out)
    x2 = bert_forward((input_id, input_mask, segment_id), p)   # (B, bert_out)
    return x1, x2                                              # ocr_* unused, as in reference


if __name__ == "__main__":
    key = jax.random.PRNGKey(0)
    kimg, kid, kocr, kparams = jax.random.split(key, 4)
    B, S = 2, 8
    img = jax.random.normal(kimg, (B, 3, 16, 16), jnp.float32)
    input_id = jax.random.randint(kid, (B, S), 0, 100, dtype=jnp.int32)
    input_mask = jnp.ones((B, S), jnp.int32).at[:, 6:].set(0)
    segment_id = jnp.zeros((B, S), jnp.int32)
    ocr_id = jax.random.randint(kocr, (B, S), 0, 100, dtype=jnp.int32)
    ocr_mask = jnp.ones((B, S), jnp.int32)

    params = init_params(kparams)
    fwd = jax.jit(tesam4align_forward)
    x1, x2 = fwd(img, (input_id, input_mask, segment_id, ocr_id, ocr_mask),
                 params)
    jax.block_until_ready((x1, x2))
    assert x1.shape == (B, 128) and x2.shape == (B, 128)
    assert bool(jnp.all(jnp.isfinite(x1))) and bool(jnp.all(jnp.isfinite(x2)))
    print("KERNEL_OK")
</pallas_src>

<mosaic_0001>
module attributes {stable_mosaic.version = 11 : i64} {
  func.func @_resnet_fused_kernel(%arg0: i32, %arg1: memref<1x256x32xf32, #tpu.memory_space<vmem>>, %arg2: memref<32x32xbf16, #tpu.memory_space<vmem>>, %arg3: memref<1x32xf32, #tpu.memory_space<vmem>>, %arg4: memref<32x128xbf16, #tpu.memory_space<vmem>>, %arg5: memref<1x128xf32, #tpu.memory_space<vmem>>, %arg6: memref<1x1x128xf32, #tpu.memory_space<vmem>>) attributes {dimension_semantics = [#tpu.dimension_semantics<parallel>], iteration_bounds = array<i64: 2>, scalar_prefetch = 0 : i64, scratch_operands = 0 : i64, tpu.core_type = #tpu.core_type<tc>, window_params = [{transform_indices = @transform_0, window_bounds = array<i64: 1, 256, 32>}, {pipeline_mode = #tpu.pipeline_mode<synchronous>, transform_indices = @transform_1, window_bounds = array<i64: 32, 32>}, {pipeline_mode = #tpu.pipeline_mode<synchronous>, transform_indices = @transform_2, window_bounds = array<i64: 1, 32>}, {pipeline_mode = #tpu.pipeline_mode<synchronous>, transform_indices = @transform_3, window_bounds = array<i64: 32, 128>}, {pipeline_mode = #tpu.pipeline_mode<synchronous>, transform_indices = @transform_4, window_bounds = array<i64: 1, 128>}, {transform_indices = @transform_5, window_bounds = array<i64: 1, 1, 128>}]} {
    %c0 = arith.constant 0 : index
    %c0_0 = arith.constant 0 : index
    %c0_1 = arith.constant 0 : index
    %0 = vector.load %arg1[%c0, %c0_0, %c0_1] : memref<1x256x32xf32, #tpu.memory_space<vmem>>, vector<1x256x32xf32>
    %1 = vector.shape_cast %0 : vector<1x256x32xf32> to vector<256x32xf32>
    %2 = arith.truncf %1 : vector<256x32xf32> to vector<256x32xbf16>
    %c0_2 = arith.constant 0 : index
    %c0_3 = arith.constant 0 : index
    %3 = vector.load %arg2[%c0_2, %c0_3] : memref<32x32xbf16, #tpu.memory_space<vmem>>, vector<32x32xbf16>
    %cst = arith.constant dense<0.000000e+00> : vector<256x32xf32>
    %4 = tpu.matmul %2, %3, %cst {dimension_numbers = #tpu.dot_dimension_numbers<[1], [0], [0], [1], [0, 0, 1, 1], [], []>} : vector<256x32xbf16>, vector<32x32xbf16>, vector<256x32xf32> -> vector<256x32xf32>
    %c0_4 = arith.constant 0 : index
    %c0_5 = arith.constant 0 : index
    %5 = vector.load %arg3[%c0_4, %c0_5] : memref<1x32xf32, #tpu.memory_space<vmem>>, vector<1x32xf32>
    %6 = vector.broadcast %5 : vector<1x32xf32> to vector<256x32xf32>
    %7 = arith.addf %4, %6 : vector<256x32xf32>
    %cst_6 = arith.constant 0.000000e+00 : f32
    %8 = vector.broadcast %cst_6 : f32 to vector<256x32xf32>
    %9 = arith.maximumf %7, %8 : vector<256x32xf32>
    %cst_7 = arith.constant dense<0.000000e+00> : vector<32xf32>
    %10 = vector.multi_reduction <add>, %9, %cst_7 [0] : vector<256x32xf32> to vector<32xf32>
    %11 = vector.shape_cast %10 : vector<32xf32> to vector<1x32xf32>
    %cst_8 = arith.constant 3.906250e-03 : f32
    %12 = vector.broadcast %cst_8 : f32 to vector<1x32xf32>
    %13 = arith.mulf %11, %12 : vector<1x32xf32>
    %14 = arith.truncf %13 : vector<1x32xf32> to vector<1x32xbf16>
    %c0_9 = arith.constant 0 : index
    %c0_10 = arith.constant 0 : index
    %15 = vector.load %arg4[%c0_9, %c0_10] : memref<32x128xbf16, #tpu.memory_space<vmem>>, vector<32x128xbf16>
    %cst_11 = arith.constant dense<0.000000e+00> : vector<1x128xf32>
    %16 = tpu.matmul %14, %15, %cst_11 {dimension_numbers = #tpu.dot_dimension_numbers<[1], [0], [0], [1], [0, 0, 1, 1], [], []>} : vector<1x32xbf16>, vector<32x128xbf16>, vector<1x128xf32> -> vector<1x128xf32>
    %c0_12 = arith.constant 0 : index
    %c0_13 = arith.constant 0 : index
    %17 = vector.load %arg5[%c0_12, %c0_13] : memref<1x128xf32, #tpu.memory_space<vmem>>, vector<1x128xf32>
    %18 = arith.addf %16, %17 : vector<1x128xf32>
    %c0_14 = arith.constant 0 : index
    %c0_15 = arith.constant 0 : index
    %c0_16 = arith.constant 0 : index
    %19 = vector.load %arg6[%c0_14, %c0_15, %c0_16] : memref<1x1x128xf32, #tpu.memory_space<vmem>>, vector<1x1x128xf32>
    %20 = vector.shape_cast %19 : vector<1x1x128xf32> to vector<1x128xf32>
    %21 = vector.shape_cast %18 : vector<1x128xf32> to vector<1x1x128xf32>
    tpu.vector_store %arg6[%c0_14, %c0_15, %c0_16], %21 {strides = array<i32>} : memref<1x1x128xf32, #tpu.memory_space<vmem>>, vector<1x1x128xf32>,
    return
  }
  func.func @transform_0(%arg0: i32) -> (i32, i32, i32) {
    %c0_i32 = arith.constant 0 : i32
    %c0_i32_0 = arith.constant 0 : i32
    %c0_i32_1 = arith.constant 0 : i32
    return %arg0, %c0_i32, %c0_i32_0 : i32, i32, i32
  }
  func.func @transform_1(%arg0: i32) -> (i32, i32) {
    %c0_i32 = arith.constant 0 : i32
    %c0_i32_0 = arith.constant 0 : i32
    %c0_i32_1 = arith.constant 0 : i32
    return %c0_i32, %c0_i32_0 : i32, i32
  }
  func.func @transform_2(%arg0: i32) -> (i32, i32) {
    %c0_i32 = arith.constant 0 : i32
    %c0_i32_0 = arith.constant 0 : i32
    %c0_i32_1 = arith.constant 0 : i32
    return %c0_i32, %c0_i32_0 : i32, i32
  }
  func.func @transform_3(%arg0: i32) -> (i32, i32) {
    %c0_i32 = arith.constant 0 : i32
    %c0_i32_0 = arith.constant 0 : i32
    %c0_i32_1 = arith.constant 0 : i32
    return %c0_i32, %c0_i32_0 : i32, i32
  }
  func.func @transform_4(%arg0: i32) -> (i32, i32) {
    %c0_i32 = arith.constant 0 : i32
    %c0_i32_0 = arith.constant 0 : i32
    %c0_i32_1 = arith.constant 0 : i32
    return %c0_i32, %c0_i32_0 : i32, i32
  }
  func.func @transform_5(%arg0: i32) -> (i32, i32, i32) {
    %c0_i32 = arith.constant 0 : i32
    %c0_i32_0 = arith.constant 0 : i32
    %c0_i32_1 = arith.constant 0 : i32
    return %arg0, %c0_i32, %c0_i32_0 : i32, i32, i32
  }
}

module attributes {stable_mosaic.version = 11 : i64} {
  func.func @_bert_fused_kernel(%arg0: i32, %arg1: memref<1x8x32xf32, #tpu.memory_space<vmem>>, %arg2: memref<1x1x8xf32, #tpu.memory_space<vmem>>, %arg3: memref<32x32xbf16, #tpu.memory_space<vmem>>, %arg4: memref<32x32xbf16, #tpu.memory_space<vmem>>, %arg5: memref<32x32xbf16, #tpu.memory_space<vmem>>, %arg6: memref<32x32xbf16, #tpu.memory_space<vmem>>, %arg7: memref<32x64xbf16, #tpu.memory_space<vmem>>, %arg8: memref<1x64xf32, #tpu.memory_space<vmem>>, %arg9: memref<64x32xbf16, #tpu.memory_space<vmem>>, %arg10: memref<1x32xf32, #tpu.memory_space<vmem>>, %arg11: memref<32x128xbf16, #tpu.memory_space<vmem>>, %arg12: memref<1x128xf32, #tpu.memory_space<vmem>>, %arg13: memref<1x1x128xf32, #tpu.memory_space<vmem>>) attributes {dimension_semantics = [#tpu.dimension_semantics<parallel>], iteration_bounds = array<i64: 2>, scalar_prefetch = 0 : i64, scratch_operands = 0 : i64, tpu.core_type = #tpu.core_type<tc>, window_params = [{transform_indices = @transform_0, window_bounds = array<i64: 1, 8, 32>}, {transform_indices = @transform_1, window_bounds = array<i64: 1, 1, 8>}, {pipeline_mode = #tpu.pipeline_mode<synchronous>, transform_indices = @transform_2, window_bounds = array<i64: 32, 32>}, {pipeline_mode = #tpu.pipeline_mode<synchronous>, transform_indices = @transform_3, window_bounds = array<i64: 32, 32>}, {pipeline_mode = #tpu.pipeline_mode<synchronous>, transform_indices = @transform_4, window_bounds = array<i64: 32, 32>}, {pipeline_mode = #tpu.pipeline_mode<synchronous>, transform_indices = @transform_5, window_bounds = array<i64: 32, 32>}, {pipeline_mode = #tpu.pipeline_mode<synchronous>, transform_indices = @transform_6, window_bounds = array<i64: 32, 64>}, {pipeline_mode = #tpu.pipeline_mode<synchronous>, transform_indices = @transform_7, window_bounds = array<i64: 1, 64>}, {pipeline_mode = #tpu.pipeline_mode<synchronous>, transform_indices = @transform_8, window_bounds = array<i64: 64, 32>}, {pipeline_mode = #tpu.pipeline_mode<synchronous>, transform_indices = @transform_9, window_bounds = array<i64: 1, 32>}, {pipeline_mode = #tpu.pipeline_mode<synchronous>, transform_indices = @transform_10, window_bounds = array<i64: 32, 128>}, {pipeline_mode = #tpu.pipeline_mode<synchronous>, transform_indices = @transform_11, window_bounds = array<i64: 1, 128>}, {transform_indices = @transform_12, window_bounds = array<i64: 1, 1, 128>}]} {
    %c0 = arith.constant 0 : index
    %c0_0 = arith.constant 0 : index
    %c0_1 = arith.constant 0 : index
    %0 = vector.load %arg1[%c0, %c0_0, %c0_1] : memref<1x8x32xf32, #tpu.memory_space<vmem>>, vector<1x8x32xf32>
    %1 = vector.shape_cast %0 : vector<1x8x32xf32> to vector<8x32xf32>
    %c0_2 = arith.constant 0 : index
    %c0_3 = arith.constant 0 : index
    %c0_4 = arith.constant 0 : index
    %2 = vector.load %arg2[%c0_2, %c0_3, %c0_4] : memref<1x1x8xf32, #tpu.memory_space<vmem>>, vector<1x1x8xf32>
    %3 = vector.shape_cast %2 : vector<1x1x8xf32> to vector<1x8xf32>
    %4 = arith.truncf %1 : vector<8x32xf32> to vector<8x32xbf16>
    %c0_5 = arith.constant 0 : index
    %c0_6 = arith.constant 0 : index
    %5 = vector.load %arg3[%c0_5, %c0_6] : memref<32x32xbf16, #tpu.memory_space<vmem>>, vector<32x32xbf16>
    %cst = arith.constant dense<0.000000e+00> : vector<8x32xf32>
    %6 = tpu.matmul %4, %5, %cst {dimension_numbers = #tpu.dot_dimension_numbers<[1], [0], [0], [1], [0, 0, 1, 1], [], []>} : vector<8x32xbf16>, vector<32x32xbf16>, vector<8x32xf32> -> vector<8x32xf32>
    %c0_7 = arith.constant 0 : index
    %c0_8 = arith.constant 0 : index
    %7 = vector.load %arg4[%c0_7, %c0_8] : memref<32x32xbf16, #tpu.memory_space<vmem>>, vector<32x32xbf16>
    %cst_9 = arith.constant dense<0.000000e+00> : vector<8x32xf32>
    %8 = tpu.matmul %4, %7, %cst_9 {dimension_numbers = #tpu.dot_dimension_numbers<[1], [0], [0], [1], [0, 0, 1, 1], [], []>} : vector<8x32xbf16>, vector<32x32xbf16>, vector<8x32xf32> -> vector<8x32xf32>
    %c0_10 = arith.constant 0 : index
    %c0_11 = arith.constant 0 : index
    %9 = vector.load %arg5[%c0_10, %c0_11] : memref<32x32xbf16, #tpu.memory_space<vmem>>, vector<32x32xbf16>
    %cst_12 = arith.constant dense<0.000000e+00> : vector<8x32xf32>
    %10 = tpu.matmul %4, %9, %cst_12 {dimension_numbers = #tpu.dot_dimension_numbers<[1], [0], [0], [1], [0, 0, 1, 1], [], []>} : vector<8x32xbf16>, vector<32x32xbf16>, vector<8x32xf32> -> vector<8x32xf32>
    %11 = arith.truncf %6 : vector<8x32xf32> to vector<8x32xbf16>
    %12 = arith.truncf %8 : vector<8x32xf32> to vector<8x32xbf16>
    %cst_13 = arith.constant dense<0.000000e+00> : vector<8x8xf32>
    %13 = tpu.matmul %11, %12, %cst_13 {dimension_numbers = #tpu.dot_dimension_numbers<[1], [1], [0], [0], [0, 0, 1, 0], [], []>} : vector<8x32xbf16>, vector<8x32xbf16>, vector<8x8xf32> -> vector<8x8xf32>
    %cst_14 = arith.constant 0.176776692 : f32
    %14 = vector.broadcast %cst_14 : f32 to vector<8x8xf32>
    %15 = arith.mulf %13, %14 : vector<8x8xf32>
    %cst_15 = arith.constant 1.000000e+00 : f32
    %16 = vector.broadcast %cst_15 : f32 to vector<1x8xf32>
    %17 = arith.subf %16, %3 : vector<1x8xf32>
    %cst_16 = arith.constant -1.000000e+09 : f32
    %18 = vector.broadcast %cst_16 : f32 to vector<1x8xf32>
    %19 = arith.mulf %17, %18 : vector<1x8xf32>
    %20 = vector.broadcast %19 : vector<1x8xf32> to vector<8x8xf32>
    %21 = arith.addf %15, %20 : vector<8x8xf32>
    %cst_17 = arith.constant dense<0xFF800000> : vector<8xf32>
    %22 = vector.multi_reduction <maximumf>, %21, %cst_17 [1] : vector<8x8xf32> to vector<8xf32>
    %23 = vector.shape_cast %22 : vector<8xf32> to vector<8x1xf32>
    %24 = vector.broadcast %23 : vector<8x1xf32> to vector<8x8xf32>
    %25 = arith.subf %21, %24 : vector<8x8xf32>
    %26 = math.exp %25 : vector<8x8xf32>
    %cst_18 = arith.constant dense<0.000000e+00> : vector<8xf32>
    %27 = vector.multi_reduction <add>, %26, %cst_18 [1] : vector<8x8xf32> to vector<8xf32>
    %28 = vector.shape_cast %27 : vector<8xf32> to vector<8x1xf32>
    %29 = tpu.reciprocal %28 {approx = true} : vector<8x1xf32> -> vector<8x1xf32>
    %30 = vector.broadcast %29 : vector<8x1xf32> to vector<8x8xf32>
    %31 = arith.mulf %26, %30 : vector<8x8xf32>
    %32 = arith.truncf %31 : vector<8x8xf32> to vector<8x8xbf16>
    %33 = arith.truncf %10 : vector<8x32xf32> to vector<8x32xbf16>
    %cst_19 = arith.constant dense<0.000000e+00> : vector<8x32xf32>
    %34 = tpu.matmul %32, %33, %cst_19 {dimension_numbers = #tpu.dot_dimension_numbers<[1], [0], [0], [1], [0, 0, 1, 1], [], []>} : vector<8x8xbf16>, vector<8x32xbf16>, vector<8x32xf32> -> vector<8x32xf32>
    %35 = arith.truncf %34 : vector<8x32xf32> to vector<8x32xbf16>
    %c0_20 = arith.constant 0 : index
    %c0_21 = arith.constant 0 : index
    %36 = vector.load %arg6[%c0_20, %c0_21] : memref<32x32xbf16, #tpu.memory_space<vmem>>, vector<32x32xbf16>
    %cst_22 = arith.constant dense<0.000000e+00> : vector<8x32xf32>
    %37 = tpu.matmul %35, %36, %cst_22 {dimension_numbers = #tpu.dot_dimension_numbers<[1], [0], [0], [1], [0, 0, 1, 1], [], []>} : vector<8x32xbf16>, vector<32x32xbf16>, vector<8x32xf32> -> vector<8x32xf32>
    %38 = arith.addf %1, %37 : vector<8x32xf32>
    %39 = arith.truncf %38 : vector<8x32xf32> to vector<8x32xbf16>
    %c0_23 = arith.constant 0 : index
    %c0_24 = arith.constant 0 : index
    %40 = vector.load %arg7[%c0_23, %c0_24] : memref<32x64xbf16, #tpu.memory_space<vmem>>, vector<32x64xbf16>
    %cst_25 = arith.constant dense<0.000000e+00> : vector<8x64xf32>
    %41 = tpu.matmul %39, %40, %cst_25 {dimension_numbers = #tpu.dot_dimension_numbers<[1], [0], [0], [1], [0, 0, 1, 1], [], []>} : vector<8x32xbf16>, vector<32x64xbf16>, vector<8x64xf32> -> vector<8x64xf32>
    %c0_26 = arith.constant 0 : index
    %c0_27 = arith.constant 0 : index
    %42 = vector.load %arg8[%c0_26, %c0_27] : memref<1x64xf32, #tpu.memory_space<vmem>>, vector<1x64xf32>
    %43 = vector.broadcast %42 : vector<1x64xf32> to vector<8x64xf32>
    %44 = arith.addf %41, %43 : vector<8x64xf32>
    %45 = arith.mulf %44, %44 : vector<8x64xf32>
    %46 = arith.mulf %44, %45 : vector<8x64xf32>
    %cst_28 = arith.constant 4.471500e-02 : f32
    %47 = vector.broadcast %cst_28 : f32 to vector<8x64xf32>
    %48 = arith.mulf %47, %46 : vector<8x64xf32>
    %49 = arith.addf %44, %48 : vector<8x64xf32>
    %cst_29 = arith.constant 0.797884583 : f32
    %50 = vector.broadcast %cst_29 : f32 to vector<8x64xf32>
    %51 = arith.mulf %50, %49 : vector<8x64xf32>
    %52 = math.tanh %51 : vector<8x64xf32>
    %cst_30 = arith.constant 1.000000e+00 : f32
    %53 = vector.broadcast %cst_30 : f32 to vector<8x64xf32>
    %54 = arith.addf %53, %52 : vector<8x64xf32>
    %cst_31 = arith.constant 5.000000e-01 : f32
    %55 = vector.broadcast %cst_31 : f32 to vector<8x64xf32>
    %56 = arith.mulf %55, %54 : vector<8x64xf32>
    %57 = arith.mulf %44, %56 : vector<8x64xf32>
    %58 = arith.truncf %57 : vector<8x64xf32> to vector<8x64xbf16>
    %c0_32 = arith.constant 0 : index
    %c0_33 = arith.constant 0 : index
    %59 = vector.load %arg9[%c0_32, %c0_33] : memref<64x32xbf16, #tpu.memory_space<vmem>>, vector<64x32xbf16>
    %cst_34 = arith.constant dense<0.000000e+00> : vector<8x32xf32>
    %60 = tpu.matmul %58, %59, %cst_34 {dimension_numbers = #tpu.dot_dimension_numbers<[1], [0], [0], [1], [0, 0, 1, 1], [], []>} : vector<8x64xbf16>, vector<64x32xbf16>, vector<8x32xf32> -> vector<8x32xf32>
    %c0_35 = arith.constant 0 : index
    %c0_36 = arith.constant 0 : index
    %61 = vector.load %arg10[%c0_35, %c0_36] : memref<1x32xf32, #tpu.memory_space<vmem>>, vector<1x32xf32>
    %62 = vector.broadcast %61 : vector<1x32xf32> to vector<8x32xf32>
    %63 = arith.addf %60, %62 : vector<8x32xf32>
    %64 = arith.addf %38, %63 : vector<8x32xf32>
    %cst_37 = arith.constant dense<0.000000e+00> : vector<1x32xf32>
    %65 = tpu.matmul %3, %64, %cst_37 {dimension_numbers = #tpu.dot_dimension_numbers<[1], [0], [0], [1], [0, 0, 1, 1], [], []>} : vector<1x8xf32>, vector<8x32xf32>, vector<1x32xf32> -> vector<1x32xf32>
    %cst_38 = arith.constant dense<0.000000e+00> : vector<1xf32>
    %66 = vector.multi_reduction <add>, %3, %cst_38 [1] : vector<1x8xf32> to vector<1xf32>
    %67 = vector.shape_cast %66 : vector<1xf32> to vector<1x1xf32>
    %cst_39 = arith.constant 1.000000e+00 : f32
    %68 = vector.broadcast %cst_39 : f32 to vector<1x1xf32>
    %69 = arith.maximumf %67, %68 : vector<1x1xf32>
    %70 = tpu.reciprocal %69 {approx = true} : vector<1x1xf32> -> vector<1x1xf32>
    %71 = vector.broadcast %70 : vector<1x1xf32> to vector<1x32xf32>
    %72 = arith.mulf %65, %71 : vector<1x32xf32>
    %73 = arith.truncf %72 : vector<1x32xf32> to vector<1x32xbf16>
    %c0_40 = arith.constant 0 : index
    %c0_41 = arith.constant 0 : index
    %74 = vector.load %arg11[%c0_40, %c0_41] : memref<32x128xbf16, #tpu.memory_space<vmem>>, vector<32x128xbf16>
    %cst_42 = arith.constant dense<0.000000e+00> : vector<1x128xf32>
    %75 = tpu.matmul %73, %74, %cst_42 {dimension_numbers = #tpu.dot_dimension_numbers<[1], [0], [0], [1], [0, 0, 1, 1], [], []>} : vector<1x32xbf16>, vector<32x128xbf16>, vector<1x128xf32> -> vector<1x128xf32>
    %c0_43 = arith.constant 0 : index
    %c0_44 = arith.constant 0 : index
    %76 = vector.load %arg12[%c0_43, %c0_44] : memref<1x128xf32, #tpu.memory_space<vmem>>, vector<1x128xf32>
    %77 = arith.addf %75, %76 : vector<1x128xf32>
    %c0_45 = arith.constant 0 : index
    %c0_46 = arith.constant 0 : index
    %c0_47 = arith.constant 0 : index
    %78 = vector.load %arg13[%c0_45, %c0_46, %c0_47] : memref<1x1x128xf32, #tpu.memory_space<vmem>>, vector<1x1x128xf32>
    %79 = vector.shape_cast %78 : vector<1x1x128xf32> to vector<1x128xf32>
    %80 = vector.shape_cast %77 : vector<1x128xf32> to vector<1x1x128xf32>
    tpu.vector_store %arg13[%c0_45, %c0_46, %c0_47], %80 {strides = array<i32>} : memref<1x1x128xf32, #tpu.memory_space<vmem>>, vector<1x1x128xf32>,
    return
  }
  func.func @transform_0(%arg0: i32) -> (i32, i32, i32) {
    %c0_i32 = arith.constant 0 : i32
    %c0_i32_0 = arith.constant 0 : i32
    %c0_i32_1 = arith.constant 0 : i32
    return %arg0, %c0_i32, %c0_i32_0 : i32, i32, i32
  }
  func.func @transform_1(%arg0: i32) -> (i32, i32, i32) {
    %c0_i32 = arith.constant 0 : i32
    %c0_i32_0 = arith.constant 0 : i32
    %c0_i32_1 = arith.constant 0 : i32
    return %arg0, %c0_i32, %c0_i32_0 : i32, i32, i32
  }
  func.func @transform_2(%arg0: i32) -> (i32, i32) {
    %c0_i32 = arith.constant 0 : i32
    %c0_i32_0 = arith.constant 0 : i32
    %c0_i32_1 = arith.constant 0 : i32
    return %c0_i32, %c0_i32_0 : i32, i32
  }
  func.func @transform_3(%arg0: i32) -> (i32, i32) {
    %c0_i32 = arith.constant 0 : i32
    %c0_i32_0 = arith.constant 0 : i32
    %c0_i32_1 = arith.constant 0 : i32
    return %c0_i32, %c0_i32_0 : i32, i32
  }
  func.func @transform_4(%arg0: i32) -> (i32, i32) {
    %c0_i32 = arith.constant 0 : i32
    %c0_i32_0 = arith.constant 0 : i32
    %c0_i32_1 = arith.constant 0 : i32
    return %c0_i32, %c0_i32_0 : i32, i32
  }
  func.func @transform_5(%arg0: i32) -> (i32, i32) {
    %c0_i32 = arith.constant 0 : i32
    %c0_i32_0 = arith.constant 0 : i32
    %c0_i32_1 = arith.constant 0 : i32
    return %c0_i32, %c0_i32_0 : i32, i32
  }
  func.func @transform_6(%arg0: i32) -> (i32, i32) {
    %c0_i32 = arith.constant 0 : i32
    %c0_i32_0 = arith.constant 0 : i32
    %c0_i32_1 = arith.constant 0 : i32
    return %c0_i32, %c0_i32_0 : i32, i32
  }
  func.func @transform_7(%arg0: i32) -> (i32, i32) {
    %c0_i32 = arith.constant 0 : i32
    %c0_i32_0 = arith.constant 0 : i32
    %c0_i32_1 = arith.constant 0 : i32
    return %c0_i32, %c0_i32_0 : i32, i32
  }
  func.func @transform_8(%arg0: i32) -> (i32, i32) {
    %c0_i32 = arith.constant 0 : i32
    %c0_i32_0 = arith.constant 0 : i32
    %c0_i32_1 = arith.constant 0 : i32
    return %c0_i32, %c0_i32_0 : i32, i32
  }
  func.func @transform_9(%arg0: i32) -> (i32, i32) {
    %c0_i32 = arith.constant 0 : i32
    %c0_i32_0 = arith.constant 0 : i32
    %c0_i32_1 = arith.constant 0 : i32
    return %c0_i32, %c0_i32_0 : i32, i32
  }
  func.func @transform_10(%arg0: i32) -> (i32, i32) {
    %c0_i32 = arith.constant 0 : i32
    %c0_i32_0 = arith.constant 0 : i32
    %c0_i32_1 = arith.constant 0 : i32
    return %c0_i32, %c0_i32_0 : i32, i32
  }
  func.func @transform_11(%arg0: i32) -> (i32, i32) {
    %c0_i32 = arith.constant 0 : i32
    %c0_i32_0 = arith.constant 0 : i32
    %c0_i32_1 = arith.constant 0 : i32
    return %c0_i32, %c0_i32_0 : i32, i32
  }
  func.func @transform_12(%arg0: i32) -> (i32, i32, i32) {
    %c0_i32 = arith.constant 0 : i32
    %c0_i32_0 = arith.constant 0 : i32
    %c0_i32_1 = arith.constant 0 : i32
    return %arg0, %c0_i32, %c0_i32_0 : i32, i32, i32
  }
}

</mosaic_0001>

<bundles_post_ra>
// kernel: tesam4align_forward.2
= control target key start
LH: loop header
LB: loop body
LE: loop exit
PB: predicated region body
PF: predicated region fallthrough
CT: control target
= control target key end

     0   :  { %10 = vsyncpa [#allocation3], 0  ;;  %s1076_s0 = inlined_call_operand.vmem [shape: f32[2,256,32], index: 0, kind: input, shape index: {}]   ;;  %s1077_s1 = inlined_call_operand.vmem [shape: bf16[32,32], index: 1, kind: input, shape index: {}]   ;;  %s1078_s2 = inlined_call_operand.vmem [shape: f32[1,32], index: 2, kind: input, shape index: {}]   ;;  %s1079_s3 = inlined_call_operand.vmem [shape: bf16[32,128], index: 3, kind: input, shape index: {}]   ;;  %s1080_s4 = inlined_call_operand.vmem [shape: f32[1,128], index: 4, kind: input, shape index: {}]   ;;  %s1081_s5 = inlined_call_operand.hbm [shape: f32[2,1,128], index: 5, kind: output, shape index: {}]  }
   0x1   :  { %12 = vsyncpa [#allocation3 + $0x1], 0  ;;  %s820_s18 = smov 0   ;;  %s822_s19 = smov 0  }
   0x2   :  { %s824_s20 = smov 0   ;;  %s826_s21 = smov 0  }
   0x3 LB: > { %s841_s22 = sadd.s32 4294967295, %s788_s21   ;;  %s634_s23 = sadd.s32 4294967294, %s788_s21   ;;  %s788_s21 = sphi %s826_s21, %s1087_s21   ;;  %s784_s20 = sphi %s824_s20, %s1086_s20   ;;  %s780_s19 = sphi %s822_s19, %s1085_s19   ;;  %s776_s18 = sphi %s820_s18, %s1084_s18  }
   0x4   : > { %s845_s24 = sadd.s32 1, %s788_s21   ;;  %s135_s25 = sadd.s32 1, %s784_s20 }
   0x5   : > { %s132_s26 = ssub.s32 %s788_s21, %s845_s24  ;;  %p145_p0 = scmp.ne.s32.totalorder %s784_s20, %s780_s19 }
   0x6   : > { %p133_p1 = scmp.eq.s32.totalorder %s132_s26, 0  ;;  %p146_p2 = scmp.eq.s32.totalorder %s841_s22, 1 }
   0x7   : > { %p151_p3 = scmp.ne.s32.totalorder %s780_s19, %s776_s18  ;;  %p152_p4 = scmp.eq.s32.totalorder %s634_s23, 1 }
   0x8   : > { %s856_s27 = scalar_select %p133_p1, %s784_s20, %s135_s25  }
   0x9   : > { %p858_p5 = por %p146_p2, %p145_p0  ;;  %p862_p6 = por %p152_p4, %p151_p3 }
   0xa   : > { %p637_p7 = scmp.ge.s32.totalorder %s788_s21, 1  ;;  %p190_p8 = scmp.lt.s32.totalorder %s788_s21, 3 }
   0xc   : > { %p191_p9 = pnand %p637_p7, %p190_p8 }
   0xd   : > { %p217_p10 = scmp.lt.s32.totalorder (!%p191_p9), %s841_s22, 1  ;;  %s215_s26 = sand.u32 (!%p191_p9), 1, %s780_s19  }
   0xe   : > { %194 = sbr.rel (%p191_p9) target bundleno = 426 (0x1aa), region = 40  ;;  %s575_s7 = scalar_lea.hbm (!%p191_p9), %s1081_s5, %s841_s22 }
   0xf   : > { %s579_s12 = sshll.u32 (!%p191_p9), %s575_s7, 4  ;;  %s746_s17 = scalar_lea.hbm (!%p191_p9), %s1081_s5, 2  ;;  %s580_s12 = int_to_ptr.hbm [resolvable:$true] %s579_s12 }
  0x10   : > { %s740_s14 = sshra.s32 (!%p191_p9), %s580_s12, 4  ;;  %s741_s14 = int_to_ptr.hbm [resolvable:$true] %s740_s14 }
  0x11   : > { %s742_s15 = scalar_lea.hbm (!%p191_p9), %s741_s14, 1  ;;  %p747_p0 = scmp.lt.s32.totalorder (!%p191_p9), %s741_s14, %s1081_s5 }
  0x12   : > { %p743_p11 = scmp.ne.s32.totalorder (!%p191_p9), %s741_s14, %s742_s15  ;;  %p748_p1 = scmp.lt.s32.totalorder (!%p191_p9), %s746_s17, %s742_s15 }
  0x13   : > { %v677_v0 = vld [vmem:[%s1077_s1 + $0x8] sm:$0xff]  ;;  %v676_v1 = vld [vmem:[%s1077_s1] sm:$0xff]  ;;  %s218_s9 = scalar_select %p217_p10, %s841_s22, 1  ;;  %vm291_vm0 = vcmask 261120  }
  0x14   : > { %346 = vmatpush.bf16.msra.mxu0 %v677_v0  ;;  %681 = vmatpush.bf16.msra.mxu2 %v677_v0  ;;  %p744_p12 = pnand %p743_p11, %p858_p5  ;;  %p749_p2 = por %p748_p1, %p747_p0 }
  0x15   : > { %682 = vmatpush.bf16.msra.mxu3 %v677_v0  ;;  %680 = vmatpush.bf16.msra.mxu1 %v677_v0  ;;  %s675_s10 = sshll.u32 %s218_s9, 8 }
  0x16   : > { %s879_s13 = scalar_lea.vmem %s1076_s0, %s675_s10  ;;  %s216_s10 = scalar_lea.vmem [#allocation2], %s215_s26 }
  0x17   : > { %v223_v2 = vld [vmem:[%s879_s13] sm:$0xff]  ;;  %v224_v3 = vld [vmem:[%s879_s13 + $0x8] sm:$0xff]  ;;  %v245_v8 = vld [vmem:[%s879_s13 + $0xb0] sm:$0xff]  ;;  %s577_s11 = sshll.u32 %s216_s10, 4  ;;  %p745_p13 = pneg %p744_p12  ;;  %s578_s11 = int_to_ptr.vmem [resolvable:$true] %s577_s11 }
  0x18   : > { %347 = vmatpush.bf16.msra.mxu0 %v676_v1  ;;  %684 = vmatpush.bf16.msra.mxu2 %v676_v1  ;;  %v235_v4 = vld [vmem:[%s879_s13 + $0x60] sm:$0xff]  ;;  %v255_v5 = vpack.c.bf16 %v224_v3, %v223_v2  ;;  %v236_v6 = vld [vmem:[%s879_s13 + $0x68] sm:$0xff]  ;;  %v246_v9 = vld [vmem:[%s879_s13 + $0xb8] sm:$0xff] }
  0x19   : > { %685 = vmatpush.bf16.msra.mxu3 %v676_v1  ;;  %683 = vmatpush.bf16.msra.mxu1 %v676_v1  ;;  %v261_v7 = vpack.c.bf16 %v236_v6, %v235_v4  ;;  %v266_v10 = vpack.c.bf16 %v246_v9, %v245_v8  ;;  %v225_v11 = vld [vmem:[%s879_s13 + $0x10] sm:$0xff]  ;;  %v226_v12 = vld [vmem:[%s879_s13 + $0x18] sm:$0xff]  ;;  %v247_v16 = vld [vmem:[%s879_s13 + $0xc0] sm:$0xff]  ;;  %p750_p3 = pnand %p749_p2, %p745_p13 }
  0x1a   : > { %v237_v13 = vld [vmem:[%s879_s13 + $0x70] sm:$0xff]  ;;  %v238_v14 = vld [vmem:[%s879_s13 + $0x78] sm:$0xff]  ;;  %v256_v15 = vpack.c.bf16 %v226_v12, %v225_v11  ;;  %v248_v17 = vld [vmem:[%s879_s13 + $0xc8] sm:$0xff] }
  0x1b   : > { %648 = vmatmul.msk.bf16.vlgmr.msra.gmra.mxu0 %vm291_vm0, %v255_v5  ;;  %654 = vmatmul.msk.bf16.vlgmr.msra.gmra.mxu2 %vm291_vm0, %v261_v7  ;;  %v262_v18 = vpack.c.bf16 %v238_v14, %v237_v13  ;;  %v267_v19 = vpack.c.bf16 %v248_v17, %v247_v16  ;;  %v233_v20 = vld [vmem:[%s879_s13 + $0x50] sm:$0xff]  ;;  %v234_v21 = vld [vmem:[%s879_s13 + $0x58] sm:$0xff]  ;;  %v227_v23 = vld [vmem:[%s879_s13 + $0x20] sm:$0xff] }
  0x1c   : > { %659 = vmatmul.msk.bf16.vlgmr.msra.gmra.mxu3 %vm291_vm0, %v266_v10  ;;  %v260_v22 = vpack.c.bf16 %v234_v21, %v233_v20  ;;  %v228_v24 = vld [vmem:[%s879_s13 + $0x28] sm:$0xff]  ;;  %v239_v25 = vld [vmem:[%s879_s13 + $0x80] sm:$0xff]  ;;  %v249_v28 = vld [vmem:[%s879_s13 + $0xd0] sm:$0xff] }
  0x1d   : > { %v240_v26 = vld [vmem:[%s879_s13 + $0x88] sm:$0xff]  ;;  %v257_v27 = vpack.c.bf16 %v228_v24, %v227_v23  ;;  %v250_v29 = vld [vmem:[%s879_s13 + $0xd8] sm:$0xff]  ;;  %v229_v32 = vld [vmem:[%s879_s13 + $0x30] sm:$0xff] }
  0x1e   : > { %653 = vmatmul.msk.bf16.vlgmr.msra.gmra.mxu1 %vm291_vm0, %v260_v22  ;;  %v263_v30 = vpack.c.bf16 %v240_v26, %v239_v25  ;;  %v268_v31 = vpack.c.bf16 %v250_v29, %v249_v28  ;;  %v230_v33 = vld [vmem:[%s879_s13 + $0x38] sm:$0xff]  ;;  %v241_v34 = vld [vmem:[%s879_s13 + $0x90] sm:$0xff]  ;;  %v251_v37 = vld [vmem:[%s879_s13 + $0xe0] sm:$0xff] }
  0x1f   : > { %v242_v35 = vld [vmem:[%s879_s13 + $0x98] sm:$0xff]  ;;  %v258_v36 = vpack.c.bf16 %v230_v33, %v229_v32  ;;  %v252_v38 = vld [vmem:[%s879_s13 + $0xe8] sm:$0xff]  ;;  %v231_v41 = vld [vmem:[%s879_s13 + $0x40] sm:$0xff] }
  0x20   : > { %v264_v39 = vpack.c.bf16 %v242_v35, %v241_v34  ;;  %v269_v40 = vpack.c.bf16 %v252_v38, %v251_v37  ;;  %v232_v42 = vld [vmem:[%s879_s13 + $0x48] sm:$0xff]  ;;  %v243_v43 = vld [vmem:[%s879_s13 + $0xa0] sm:$0xff]  ;;  %v253_v46 = vld [vmem:[%s879_s13 + $0xf0] sm:$0xff] }
  0x21   : > { %v244_v44 = vld [vmem:[%s879_s13 + $0xa8] sm:$0xff]  ;;  %v259_v45 = vpack.c.bf16 %v232_v42, %v231_v41  ;;  %v254_v47 = vld [vmem:[%s879_s13 + $0xf8] sm:$0xff]  ;;  %v948_v1 = vld [vmem:[%s1078_s2] ss:$0 sm:$0xff]  ;;  %s567_s13 = scalar_lea.sflag [#allocation3], %s215_s26 }
  0x22   : > { %v265_v48 = vpack.c.bf16 %v244_v44, %v243_v43  ;;  %v270_v49 = vpack.c.bf16 %v254_v47, %v253_v46 }
  0x2b   : > { %649 = vmatmul.msk.bf16.gmra.mxu0 %vm291_vm0, %v256_v15  ;;  %655 = vmatmul.msk.bf16.gmra.mxu2 %vm291_vm0, %v262_v18 }
  0x2c   : > { %660 = vmatmul.msk.bf16.gmra.mxu3 %vm291_vm0, %v267_v19 }
  0x3b   : > { %650 = vmatmul.msk.bf16.gmra.mxu0 %vm291_vm0, %v257_v27  ;;  %656 = vmatmul.msk.bf16.gmra.mxu2 %vm291_vm0, %v263_v30 }
  0x3c   : > { %661 = vmatmul.msk.bf16.gmra.mxu3 %vm291_vm0, %v268_v31 }
  0x4b   : > { %651 = vmatmul.msk.bf16.gmra.mxu0 %vm291_vm0, %v258_v36  ;;  %657 = vmatmul.msk.bf16.gmra.mxu2 %vm291_vm0, %v264_v39 }
  0x4c   : > { %662 = vmatmul.msk.bf16.gmra.mxu3 %vm291_vm0, %v269_v40 }
  0x5b   : > { %652 = vmatmul.msk.bf16.gmra.mxu0 %vm291_vm0, %v259_v45  ;;  %658 = vmatmul.msk.bf16.gmra.mxu2 %vm291_vm0, %v265_v48 }
  0x5c   : > { %663 = vmatmul.msk.bf16.gmra.mxu3 %vm291_vm0, %v270_v49 }
  0x98   : > { %v349_v50 = vpop.f32.mrf.mxu0 }
  0x99   : > { %v350_v5 = vadd.f32 %v948_v1, %v349_v50 }
  0x9b   : > { %v429_v10 = vmax.f32 %v350_v5, 0.0  ;;  %v374_v16 = vpop.f32.mrf.mxu1 }
  0x9c   : > { %v375_v43 = vadd.f32 %v948_v1, %v374_v16 }
  0x9d   : > { %v461_v19 = vsel %vm291_vm0, %v429_v10, 0.0 }
  0x9e   : > { %v929_v51 = vpop.f32.mrf.mxu2 }
  0x9f   : > { %v933_v55 = vpop.f32.mrf.mxu3  ;;  %v380_v50 = vadd.f32 %v948_v1, %v929_v51 }
  0xa0   : > { %v351_v52 = vpop.f32.mrf.mxu0 }
  0xa1   : > { %v352_v4 = vadd.f32 %v948_v1, %v351_v52  ;;  %v439_v52 = vmax.f32 %v375_v43, 0.0  ;;  %v441_v5 = vmax.f32 %v380_v50, 0.0 }
  0xa3   : > { %v430_v7 = vmax.f32 %v352_v4, 0.0  ;;  %v376_v38 = vpop.f32.mrf.mxu1 }
  0xa4   : > { %v377_v47 = vadd.f32 %v948_v1, %v376_v38 }
  0xa5   : > { %v462_v13 = vsel %vm291_vm0, %v430_v7, 0.0  ;;  %v480_v7 = vsel %vm291_vm0, %v439_v52, 0.0 }
  0xa6   : > { %v931_v53 = vpop.f32.mrf.mxu2  ;;  %v463_v23 = vadd.f32 %v462_v13, %v461_v19  ;;  %v484_v13 = vsel %vm291_vm0, %v441_v5, 0.0 }
  0xa7   : > { %v937_v58 = vpop.f32.mrf.mxu3 }
  0xa8   : > { %v354_v54 = vpop.f32.mrf.mxu0 }
  0xa9   : > { %v355_v6 = vadd.f32 %v948_v1, %v354_v54 }
  0xab   : > { %v431_v11 = vmax.f32 %v355_v6, 0.0 }
  0xad   : > { %v464_v20 = vsel %vm291_vm0, %v431_v11, 0.0 }
  0xae   : > { %v935_v56 = vpop.f32.mrf.mxu2  ;;  %v465_v27 = vadd.f32 %v464_v20, %v463_v23 }
  0xaf   : > { %v941_v61 = vpop.f32.mrf.mxu3  ;;  %v385_v6 = vadd.f32 %v948_v1, %v935_v56 }
  0xb0   : > { %v356_v57 = vpop.f32.mrf.mxu0 }
  0xb1   : > { %v357_v8 = vadd.f32 %v948_v1, %v356_v57 }
  0xb3   : > { %v432_v14 = vmax.f32 %v357_v8, 0.0 }
  0xb5   : > { %v466_v24 = vsel %vm291_vm0, %v432_v14, 0.0  ;;  %v443_v14 = vmax.f32 %v385_v6, 0.0 }
  0xb6   : > { %v939_v59 = vpop.f32.mrf.mxu2  ;;  %v467_v32 = vadd.f32 %v466_v24, %v465_v27 }
  0xb7   : > { %v952_v3 = vpop.f32.mrf.mxu3  ;;  %v387_v11 = vadd.f32 %v948_v1, %v939_v59 }
  0xb8   : > { %v359_v60 = vpop.f32.mrf.mxu0 }
  0xb9   : > { %v360_v12 = vadd.f32 %v948_v1, %v359_v60  ;;  %v382_v60 = vadd.f32 %v948_v1, %v931_v53  ;;  %v444_v19 = vmax.f32 %v387_v11, 0.0 }
  0xbb   : > { %v433_v21 = vmax.f32 %v360_v12, 0.0  ;;  %v442_v51 = vmax.f32 %v382_v60, 0.0 }
  0xbd   : > { %v468_v29 = vsel %vm291_vm0, %v433_v21, 0.0  ;;  %v486_v56 = vsel %vm291_vm0, %v442_v51, 0.0 }
  0xbe   : > { %v943_v63 = vpop.f32.mrf.mxu2  ;;  %v469_v35 = vadd.f32 %v468_v29, %v467_v32 }
  0xbf   : > { %v961_v18 = vpop.f32.mrf.mxu3 }
  0xc0   : > { %v361_v62 = vpop.f32.mrf.mxu0 }
  0xc1   : > { %v362_v15 = vadd.f32 %v948_v1, %v361_v62  ;;  %v440_v62 = vmax.f32 %v377_v47, 0.0 }
  0xc3   : > { %v434_v25 = vmax.f32 %v362_v15, 0.0  ;;  %v482_v12 = vsel %vm291_vm0, %v440_v62, 0.0  ;;  %v390_v15 = vadd.f32 %v948_v1, %v943_v63  ;;  %v415_v62 = vadd.f32 %v948_v1, %v961_v18 }
  0xc5   : > { %v470_v33 = vsel %vm291_vm0, %v434_v25, 0.0  ;;  %v445_v59 = vmax.f32 %v390_v15, 0.0  ;;  %v490_v25 = vsel %vm291_vm0, %v444_v19, 0.0 }
  0xc6   : > { %v950_v2 = vpop.f32.mrf.mxu2  ;;  %v471_v39 = vadd.f32 %v470_v33, %v469_v35 }
  0xc7   : > { %v972_v41 = vpop.f32.mrf.mxu3  ;;  %v392_v20 = vadd.f32 %v948_v1, %v950_v2 }
  0xc8   : > { %v364_v0 = vpop.f32.mrf.mxu0 }
  0xc9   : > { %v365_v22 = vadd.f32 %v948_v1, %v364_v0 }
  0xcb   : > { %v435_v30 = vmax.f32 %v365_v22, 0.0  ;;  %v488_v22 = vsel %vm291_vm0, %v443_v14, 0.0 }
  0xcd   : > { %v472_v36 = vsel %vm291_vm0, %v435_v30, 0.0  ;;  %v492_v30 = vsel %vm291_vm0, %v445_v59, 0.0 }
  0xce   : > { %v394_v17 = vpop.f32.mrf.mxu2  ;;  %v473_v44 = vadd.f32 %v472_v36, %v471_v39  ;;  %v405_v36 = vadd.f32 %v948_v1, %v933_v55  ;;  %v679_v55 = vld [vmem:[%s1079_s3 + $0x8] sm:$0xff] }
  0xcf   : > { %v419_v10 = vpop.f32.mrf.mxu3  ;;  %v395_v23 = vadd.f32 %v948_v1, %v394_v17  ;;  %558 = vmatpush.bf16.msrb.mxu1 %v679_v55 }
  0xd0   : > { %v366_v9 = vpop.f32.mrf.mxu0 }
  0xd1   : > { %v367_v26 = vadd.f32 %v948_v1, %v366_v9 }
  0xd3   : > { %v436_v34 = vmax.f32 %v367_v26, 0.0  ;;  %v446_v26 = vmax.f32 %v392_v20, 0.0 }
  0xd5   : > { %v474_v42 = vsel %vm291_vm0, %v436_v34, 0.0  ;;  %v494_v33 = vsel %vm291_vm0, %v446_v26, 0.0 }
  0xd6   : > { %v396_v40 = vpop.f32.mrf.mxu2  ;;  %v475_v49 = vadd.f32 %v474_v42, %v473_v44 }
  0xd7   : > { %v397_v27 = vadd.f32 %v948_v1, %v396_v40  ;;  %v421_v29 = vpop.f32.mrf.mxu3  ;;  %v407_v40 = vadd.f32 %v948_v1, %v937_v58  ;;  %v412_v58 = vadd.f32 %v948_v1, %v952_v3  ;;  %v417_v3 = vadd.f32 %v948_v1, %v972_v41 }
  0xd8   : > { %v369_v28 = vpop.f32.mrf.mxu0  ;;  %v422_v18 = vadd.f32 %v948_v1, %v421_v29 }
  0xd9   : > { %v370_v31 = vadd.f32 %v948_v1, %v369_v28  ;;  %v448_v34 = vmax.f32 %v397_v27, 0.0  ;;  %v452_v50 = vmax.f32 %v407_v40, 0.0  ;;  %v454_v5 = vmax.f32 %v412_v58, 0.0 }
  0xda   : > { %v458_v19 = vmax.f32 %v422_v18, 0.0 }
  0xdb   : > { %v437_v37 = vmax.f32 %v370_v31, 0.0  ;;  %v447_v31 = vmax.f32 %v395_v23, 0.0  ;;  %v498_v42 = vsel %vm291_vm0, %v448_v34, 0.0  ;;  %v510_v11 = vsel %vm291_vm0, %v454_v5, 0.0 }
  0xdc   : > { %v518_v23 = vsel %vm291_vm0, %v458_v19, 0.0 }
  0xdd   : > { %v476_v46 = vsel %vm291_vm0, %v437_v37, 0.0  ;;  %v496_v37 = vsel %vm291_vm0, %v447_v31, 0.0 }
  0xde   : > { %v477_v57 = vadd.f32 %v476_v46, %v475_v49  ;;  %v399_v9 = vpop.f32.mrf.mxu2  ;;  %v410_v46 = vadd.f32 %v948_v1, %v941_v61 }
  0xdf   : > { %v400_v2 = vadd.f32 %v948_v1, %v399_v9  ;;  %v424_v49 = vpop.f32.mrf.mxu3  ;;  %v420_v9 = vadd.f32 %v948_v1, %v419_v10 }
  0xe0   : > { %v371_v45 = vpop.f32.mrf.mxu0  ;;  %v453_v60 = vmax.f32 %v410_v46, 0.0  ;;  %v425_v41 = vadd.f32 %v948_v1, %v424_v49 }
  0xe1   : > { %v372_v48 = vadd.f32 %v948_v1, %v371_v45  ;;  %v449_v38 = vmax.f32 %v400_v2, 0.0  ;;  %v451_v45 = vmax.f32 %v405_v36, 0.0  ;;  %v457_v15 = vmax.f32 %v420_v9, 0.0 }
  0xe3   : > { %v438_v54 = vmax.f32 %v372_v48, 0.0  ;;  %v500_v47 = vsel %vm291_vm0, %v449_v38, 0.0 }
  0xe5   : > { %v478_v0 = vsel %vm291_vm0, %v438_v54, 0.0  ;;  %v678_v54 = vld [vmem:[%s1079_s3] sm:$0xff] }
  0xe6   : > { %v479_v4 = vadd.f32 %v478_v0, %v477_v57  ;;  %v401_v28 = vpop.f32.mrf.mxu2  ;;  %v504_v57 = vsel %vm291_vm0, %v451_v45, 0.0  ;;  %559 = vmatpush.bf16.msrb.mxu1 %v678_v54 }
  0xe7   : > { %v402_v17 = vadd.f32 %v948_v1, %v401_v28 }
  0xe8   : > { %v481_v8 = vadd.f32 %v480_v7, %v479_v4  ;;  %v506_v4 = vsel %vm291_vm0, %v452_v50, 0.0  ;;  %v508_v7 = vsel %vm291_vm0, %v453_v60, 0.0 }
  0xe9   : > { %v450_v43 = vmax.f32 %v402_v17, 0.0  ;;  %v536_v17 = vld [vmem:[%s1080_s4] sm:$0x1] }
  0xea   : > { %v483_v53 = vadd.f32 %v482_v12, %v481_v8  ;;  %v455_v8 = vmax.f32 %v415_v62, 0.0  ;;  %v456_v12 = vmax.f32 %v417_v3, 0.0 }
  0xeb   : > { %v502_v52 = vsel %vm291_vm0, %v450_v43, 0.0 }
  0xec   : > { %v485_v16 = vadd.f32 %v484_v13, %v483_v53  ;;  %v426_v13 = vpop.f32.mrf.mxu3  ;;  %v512_v14 = vsel %vm291_vm0, %v455_v8, 0.0 }
  0xed   : > { %v427_v20 = vadd.f32 %v948_v1, %v426_v13 }
  0xee   : > { %v487_v21 = vadd.f32 %v486_v56, %v485_v16  ;;  %v514_v56 = vsel %vm291_vm0, %v456_v12, 0.0 }
  0xf0   : > { %v489_v24 = vadd.f32 %v488_v22, %v487_v21  ;;  %v516_v21 = vsel %vm291_vm0, %v457_v15, 0.0  ;;  %v459_v22 = vmax.f32 %v425_v41, 0.0 }
  0xf2   : > { %v491_v63 = vadd.f32 %v490_v25, %v489_v24  ;;  %v460_v24 = vmax.f32 %v427_v20, 0.0  ;;  %v520_v26 = vsel %vm291_vm0, %v459_v22, 0.0 }
  0xf4   : > { %v493_v32 = vadd.f32 %v492_v30, %v491_v63  ;;  %v522_v63 = vsel %vm291_vm0, %v460_v24, 0.0 }
  0xf6   : > { %v495_v35 = vadd.f32 %v494_v33, %v493_v32 }
  0xf8   : > { %v497_v39 = vadd.f32 %v496_v37, %v495_v35 }
  0xfa   : > { %v499_v44 = vadd.f32 %v498_v42, %v497_v39 }
  0xfc   : > { %v501_v48 = vadd.f32 %v500_v47, %v499_v44 }
  0xfe   : > { %v503_v61 = vadd.f32 %v502_v52, %v501_v48 }
 0x100   : > { %v505_v0 = vadd.f32 %v504_v57, %v503_v61 }
 0x102   : > { %v507_v6 = vadd.f32 %v506_v4, %v505_v0 }
 0x104   : > { %v509_v51 = vadd.f32 %v508_v7, %v507_v6 }
 0x106   : > { %v511_v53 = vadd.f32 %v510_v11, %v509_v51 }
 0x108   : > { %v513_v16 = vadd.f32 %v512_v14, %v511_v53 }
 0x10a   : > { %v515_v10 = vadd.f32 %v514_v56, %v513_v16 }
 0x10c   : > { %v517_v59 = vadd.f32 %v516_v21, %v515_v10 }
 0x10e   : > { %v519_v25 = vadd.f32 %v518_v23, %v517_v59 }
 0x110   : > { %v521_v27 = vadd.f32 %v520_v26, %v519_v25 }
 0x112   : > { %v523_v28 = vadd.f32 %v522_v63, %v521_v27 }
 0x114   : > { %v524_v29 = vrot.slane %v523_v28, 4 }
 0x116   : > { %v525_v30 = vadd.f32 %v524_v29, %v523_v28 }
 0x118   : > { %v526_v1 = vrot.slane %v525_v30, 2 }
 0x11a   : > { %v527_v31 = vadd.f32 %v526_v1, %v525_v30 }
 0x11c   : > { %v528_v2 = vrot.slane %v527_v31, 1 }
 0x11e   : > { %v529_v32 = vadd.f32 %v528_v2, %v527_v31 }
 0x120   : > { %v530_v33 = vmul.f32 0.00390625, %v529_v32 }
 0x122   : > { %v531_v34 = vpack.c.bf16 %v530_v33, %v530_v33 }
 0x124   : > { %672 = vmatmul.msk.bf16.vlgmr.msrb.gmra.mxu1 %vm291_vm0, %v531_v34 }
 0x1a1   : > { %v561_v35 = vpop.f32.mrf.mxu1 }
 0x1a2   : > { %v562_v36 = vadd.f32 %v561_v35, %v536_v17 }
 0x1a4   : > { %565 = vst [vmem:[%s216_s10] sm:$0x1] %v562_v36 }
 0x1a5   : > { %753 = shalt.err (!%p750_p3)
}
 0x1a6   : > { %686 = dma.vmem_to_hbm [thread:$0]  (%p858_p5), %s578_s11, 16, %s580_s12, %s567_s13  }
 0x1a9   : > { %v563_v37 = vpop.f32.mrf.mxu1 }
 0x1aa PF: > { %p692_p4 = scmp.ge.s32.totalorder %s788_s21, 2  ;;  %s591_s26 = sand.u32 1, %s776_s18  }
 0x1ab   : > { %s592_s30 = scalar_lea.sflag [#allocation3], %s591_s26 }
 0x1ac   : > { %p689_p7 = pnand %p692_p4, %p862_p6 }
 0x1ae   : > { %p690_p8 = pneg %p689_p7 }
 0x1b0   : > { %771 = dma.done.wait (%p690_p8), %s592_s30, 16  }
 0x1b1   : > { %773 = vsyncadd (%p690_p8), %s592_s30, 4294967280  ;;  %p15_p9 = scmp.ge.s32.totalorder %s845_s24, 4   ;;  %s1084_s18 = smov %s780_s19 }
 0x1b2   : > { %s1085_s19 = smov %s784_s20  ;;  %s1086_s20 = smov %s856_s27 }
 0x1b3   : > { %s1087_s21 = smov %s845_s24  ;;  %17 = sbr.rel (!%p15_p9) target bundleno = 3 (0x3), region = 75 }
 0x1b8   :  { %597 = vsyncpa [#allocation3], 1 }
 0x1b9   :  { %599 = vsyncpa [#allocation3 + $0x1], 1 }

// kernel: tesam4align_forward.3
= control target key start
LH: loop header
LB: loop body
LE: loop exit
PB: predicated region body
PF: predicated region fallthrough
CT: control target
= control target key end

     0   :  { %s1298_s0 = inlined_call_operand.vmem [shape: f32[2,8,32], index: 0, kind: input, shape index: {}]   ;;  %s1299_s1 = inlined_call_operand.vmem [shape: f32[2,1,8], index: 1, kind: input, shape index: {}]   ;;  %s1300_s2 = inlined_call_operand.vmem [shape: bf16[32,32], index: 2, kind: input, shape index: {}]   ;;  %s1301_s3 = inlined_call_operand.vmem [shape: bf16[32,32], index: 3, kind: input, shape index: {}]   ;;  %s1302_s4 = inlined_call_operand.vmem [shape: bf16[32,32], index: 4, kind: input, shape index: {}]   ;;  %s1303_s5 = inlined_call_operand.vmem [shape: bf16[32,32], index: 5, kind: input, shape index: {}]   ;;  %s1304_s6 = inlined_call_operand.vmem [shape: bf16[32,64], index: 6, kind: input, shape index: {}]   ;;  %s1305_s7 = inlined_call_operand.vmem [shape: f32[1,64], index: 7, kind: input, shape index: {}]   ;;  %s1306_s8 = inlined_call_operand.vmem [shape: bf16[64,32], index: 8, kind: input, shape index: {}]   ;;  %s1307_s9 = inlined_call_operand.vmem [shape: f32[1,32], index: 9, kind: input, shape index: {}]   ;;  %s1308_s10 = inlined_call_operand.vmem [shape: bf16[32,128], index: 10, kind: input, shape index: {}]   ;;  %s1309_s11 = inlined_call_operand.vmem [shape: f32[1,128], index: 11, kind: input, shape index: {}]   ;;  %s1310_s12 = inlined_call_operand.hbm [shape: f32[2,1,128], index: 12, kind: output, shape index: {}]  }
   0x1   :  { %1312 = sst [smem:[#allocation7_spill]] %s1298_s0 }
   0x2   :  { %17 = vsyncpa [#allocation3], 0 }
   0x3   :  { %19 = vsyncpa [#allocation3 + $0x1], 0  ;;  %s1131_s21 = smov 0   ;;  %s1133_s22 = smov 0  }
   0x4   :  { %s1135_s23 = smov 0   ;;  %s1137_s24 = smov 0  }
   0x5 LB: > { %1313 = sst [smem:[#allocation5_spill]] %s1060_s23  ;;  %s1152_s25 = sadd.s32 4294967295, %s1064_s24   ;;  %s1064_s24 = sphi %s1137_s24, %s1322_s24   ;;  %s1060_s23 = sphi %s1135_s23, %s1319_s23   ;;  %s1056_s22 = sphi %s1133_s22, %s1321_s22   ;;  %s1052_s21 = sphi %s1131_s21, %s1320_s21  }
   0x6   : > { %s856_s26 = sadd.s32 4294967294, %s1064_s24   ;;  %s1156_s27 = sadd.s32 1, %s1064_s24  }
   0x7   : > { %s294_s28 = sadd.s32 1, %s1060_s23  ;;  %s291_s29 = ssub.s32 %s1064_s24, %s1156_s27 }
   0x8   : > { %p304_p0 = scmp.ne.s32.totalorder %s1060_s23, %s1056_s22  ;;  %p292_p1 = scmp.eq.s32.totalorder %s291_s29, 0 }
   0x9   : > { %p305_p2 = scmp.eq.s32.totalorder %s1152_s25, 1  ;;  %p310_p3 = scmp.ne.s32.totalorder %s1056_s22, %s1052_s21 }
   0xa   : > { %p311_p4 = scmp.eq.s32.totalorder %s856_s26, 1  ;;  %p859_p7 = scmp.ge.s32.totalorder %s1064_s24, 1 }
   0xb   : > { %s1167_s30 = scalar_select %p292_p1, %s1060_s23, %s294_s28  }
   0xc   : > { %p1169_p5 = por %p305_p2, %p304_p0  ;;  %p1173_p6 = por %p311_p4, %p310_p3 }
   0xd   : > { %1314 = sst [smem:[#allocation6_spill]] %s1167_s30  ;;  %p372_p8 = scmp.lt.s32.totalorder %s1064_s24, 3 }
   0xf   : > { %p373_p9 = pnand %p859_p7, %p372_p8 }
  0x10   : > { %p415_p10 = scmp.lt.s32.totalorder (!%p373_p9), %s1152_s25, 1  ;;  %s1317_s0 = sld [smem:[#allocation7_spill]] (!%p373_p9) }
  0x11   : > { %376 = sbr.rel (%p373_p9) target bundleno = 1377 (0x561), region = 68  ;;  %s788_s30 = scalar_lea.hbm (!%p373_p9), %s1310_s12, %s1152_s25 }
  0x16   : > { %v938_v0 = vld [vmem:[%s1300_s2 + $0x8] sm:$0xff]  ;;  %v937_v2 = vld [vmem:[%s1300_s2] sm:$0xff]  ;;  %s416_s29 = scalar_select %p415_p10, %s1152_s25, 1  ;;  %vm442_vm0 = vcmask 261120   ;;  %vm545_vm1 = vcmask 64512   ;;  %vm562_vm2 = vcmask 1043456  }
  0x17   : > { %v940_v1 = vld [vmem:[%s1301_s3 + $0x8] sm:$0xff]  ;;  %452 = vmatpush.bf16.msra.mxu0 %v938_v0  ;;  %v939_v3 = vld [vmem:[%s1301_s3] sm:$0xff]  ;;  %v950_v48 = vld [vmem:[%s1306_s8 + $0x18] sm:$0xff]  ;;  %vm696_vm3 = vcmask 523264   ;;  %vm737_vm4 = vcmask 57344  }
  0x18   : > { %481 = vmatpush.bf16.msra.mxu1 %v940_v1  ;;  %s860_s15 = sshll.u32 %s416_s29, 3  ;;  %v942_v13 = vld [vmem:[%s1302_s4 + $0x8] sm:$0xff]  ;;  %v941_v14 = vld [vmem:[%s1302_s4] sm:$0xff]  ;;  %s421_s26 = scalar_lea.vmem %s1299_s1, %s416_s29  ;;  %v949_v49 = vld [vmem:[%s1306_s8 + $0x10] sm:$0xff] }
  0x19   : > { %s418_s23 = scalar_lea.vmem %s1317_s0, %s860_s15  ;;  %510 = vmatpush.bf16.msra.mxu2 %v942_v13  ;;  %v1214_v15 = vld [vmem:[%s421_s26] sm:$0x1]  ;;  %v944_v33 = vld [vmem:[%s1303_s5 + $0x8] sm:$0xff]  ;;  %s413_s15 = sand.u32 1, %s1056_s22  }
  0x1a   : > { %v1196_v4 = vld [vmem:[%s418_s23] sm:$0xff]  ;;  %v539_v16 = vsub.f32 1.0, %v1214_v15  ;;  %v946_v39 = vld [vmem:[%s1304_s6 + $0x8] sm:$0xff]  ;;  %s414_s19 = scalar_lea.vmem [#allocation2], %s413_s15  ;;  %s792_s26 = sshll.u32 %s788_s30, 4  ;;  %s793_s26 = int_to_ptr.hbm [resolvable:$true] %s792_s26 }
  0x1b   : > { %453 = vmatpush.bf16.msra.mxu0 %v937_v2  ;;  %v425_v5 = vpack.c.bf16 %v1196_v4, %v1196_v4  ;;  %v943_v38 = vld [vmem:[%s1303_s5] sm:$0xff]  ;;  %v948_v50 = vld [vmem:[%s1306_s8 + $0x8] sm:$0xff]  ;;  %v738_v2 = vsel %vm737_vm4, %v1214_v15, 0.0  ;;  %s790_s20 = sshll.u32 %s414_s19, 4  ;;  %s780_s28 = scalar_lea.sflag [#allocation3], %s413_s15  ;;  %s791_s20 = int_to_ptr.vmem [resolvable:$true] %s790_s20 }
  0x1c   : > { %482 = vmatpush.bf16.msra.mxu1 %v939_v3  ;;  %v540_v17 = vmul.f32 -1e+09, %v539_v16  ;;  %v945_v43 = vld [vmem:[%s1304_s6] sm:$0xff]  ;;  %739 = vadd.xlane.f32.xlu1 %v738_v2  ;;  %s1016_s29 = sshra.s32 %s793_s26, 4  ;;  %s1022_s23 = scalar_lea.hbm %s1310_s12, 2  ;;  %s1017_s29 = int_to_ptr.hbm [resolvable:$true] %s1016_s29 }
  0x1d   : > { %511 = vmatpush.bf16.msra.mxu2 %v941_v14  ;;  %v947_v51 = vld [vmem:[%s1306_s8] sm:$0xff]  ;;  %s1018_s0 = scalar_lea.hbm %s1017_s29, 1  ;;  %p1023_p0 = scmp.lt.s32.totalorder %s1017_s29, %s1310_s12 }
  0x1e   : > { %869 = vmatmul.msk.bf16.vlgmr.msra.gmra.mxu0 %vm442_vm0, %v425_v5  ;;  %v542_v18 = vperm.slane %v540_v17, 0  ;;  %v992_v52 = vld [vmem:[%s1305_s7] ss:$0 sm:$0xff]  ;;  %p1019_p11 = scmp.ne.s32.totalorder %s1017_s29, %s1018_s0  ;;  %p1024_p1 = scmp.lt.s32.totalorder %s1022_s23, %s1018_s0 }
  0x1f   : > { %878 = vmatmul.msk.bf16.vlgmr.msra.gmra.mxu1 %vm442_vm0, %v425_v5  ;;  %v993_v3 = vld [vmem:[%s1307_s9] ss:$0 sm:$0xff] }
  0x20   : > { %887 = vmatmul.msk.bf16.vlgmr.msra.gmra.mxu2 %vm442_vm0, %v425_v5  ;;  %605 = vmatpush.bf16.msrb.mxu1 %v944_v33  ;;  %p1020_p12 = pnand %p1019_p11, %p1169_p5  ;;  %p1025_p2 = por %p1024_p1, %p1023_p0 }
  0x21   : > { %643 = vmatpush.bf16.msrb.mxu2 %v946_v39 }
  0x22   : > { %p1021_p13 = pneg %p1020_p12 }
  0x24   : > { %606 = vmatpush.bf16.msrb.mxu1 %v943_v38  ;;  %p1026_p3 = pnand %p1025_p2, %p1021_p13 }
  0x25   : > { %644 = vmatpush.bf16.msrb.mxu2 %v945_v43 }
  0x9b   : > { %v455_v6 = vpop.f32.mrf.mxu0 }
  0x9c   : > { %v484_v7 = vpop.f32.mrf.mxu1  ;;  %v517_v10 = vpack.c.bf16 %v455_v6, %v455_v6 }
  0x9d   : > { %v518_v8 = vpack.c.bf16 %v484_v7, %v484_v7 }
  0x9f   : > { %v523_v9 = vsel %vm442_vm0, %v518_v8, 0  ;;  %v952_v8 = vld [vmem:[%s1308_s10 + $0x8] sm:$0xff] }
  0xa0   : > { %532 = vmatpush.bf16.xpose.msra.mxu3 %v523_v9  ;;  %771 = vmatpush.bf16.msra.mxu1 %v952_v8  ;;  %v951_v9 = vld [vmem:[%s1308_s10] sm:$0xff] }
  0xa3   : > { %v457_v11 = vpop.f32.mrf.mxu0  ;;  %v513_v24 = vpop.f32.mrf.mxu2 }
  0xa4   : > { %v486_v12 = vpop.f32.mrf.mxu1  ;;  %v558_v31 = vpack.c.bf16 %v513_v24, %v513_v24  ;;  %772 = vmatpush.bf16.msra.mxu1 %v951_v9 }
  0xa6   : > { %v564_v32 = vsel %vm562_vm2, %v558_v31, 0 }
  0xa7   : > { %888 = vmatmul.msk.bf16.vlgmr.msra.gmra.mxu3 %vm442_vm0, %v517_v10  ;;  %573 = vmatpush.bf16.msrb.mxu0 %v564_v32  ;;  %v740_v10 = vpop.xlane.xlu1 %739 }
  0xa8   : > { %704 = vmatpush.bf16.msrb.mxu3 %v950_v48  ;;  %v741_v11 = vmax.f32 %v740_v10, 1.0 }
  0xab   : > { %v515_v28 = vpop.f32.mrf.mxu2 }
  0xac   : > { %705 = vmatpush.bf16.msrb.mxu3 %v949_v49 }
  0xb0   : > { %706 = vmatpush.bf16.msrb.mxu3 %v948_v50 }
  0xb4   : > { %707 = vmatpush.bf16.msrb.mxu3 %v947_v51 }
 0x12a   : > { %v534_v19 = vpop.f32.mrf.mxu3 }
 0x12b   : > { %v538_v20 = vmul.f32 0.17677669, %v534_v19 }
 0x12d   : > { %v544_v21 = vadd.f32 %v542_v18, %v538_v20 }
 0x12f   : > { %v546_v22 = vsel %vm545_vm1, %v544_v21, -inf }
 0x130   : > { %547 = vmax.xlane.f32.xlu0 %v546_v22 }
 0x132   : > { %v536_v23 = vpop.f32.mrf.mxu3 }
 0x1a3   : > { %v548_v25 = vpop.xlane.xlu0 %547 }
 0x1a4   : > { %v549_v26 = vsub.f32 %v544_v21, %v548_v25 }
 0x1a6   : > { %v550_v27 = vmul.f32 1.442695, %v549_v26 }
 0x1a8   : > { %994 = vpow2.f32 %v550_v27 }
 0x1ae   : > { %v995_v29 = vpop.eup %994 }
 0x1af   : > { %v552_v30 = vsel %vm545_vm1, %v995_v29, 0.0 }
 0x1b0   : > { %553 = vadd.xlane.f32.xlu0 %v552_v30 }
 0x223   : > { %v554_v34 = vpop.xlane.xlu0 %553 }
 0x224   : > { %996 = vrcp.f32 %v554_v34 }
 0x22a   : > { %v997_v35 = vpop.eup %996 }
 0x22b   : > { %v556_v36 = vmul.f32 %v997_v35, %v995_v29 }
 0x22d   : > { %v557_v37 = vpack.c.bf16 %v556_v36, %v556_v36 }
 0x22f   : > { %889 = vmatmul.msk.bf16.vlgmr.msrb.gmra.mxu0 %vm545_vm1, %v557_v37 }
 0x2ac   : > { %v575_v40 = vpop.f32.mrf.mxu0 }
 0x2ad   : > { %v579_v41 = vpack.c.bf16 %v575_v40, %v575_v40 }
 0x2af   : > { %898 = vmatmul.msk.bf16.vlgmr.msrb.gmra.mxu1 %vm442_vm0, %v579_v41 }
 0x2b4   : > { %v577_v42 = vpop.f32.mrf.mxu0 }
 0x32c   : > { %v608_v44 = vpop.f32.mrf.mxu1 }
 0x32d   : > { %v612_v45 = vadd.f32 %v608_v44, %v1196_v4 }
 0x32f   : > { %v613_v46 = vpack.c.bf16 %v612_v45, %v612_v45 }
 0x331   : > { %907 = vmatmul.msk.bf16.vlgmr.msrb.gmra.mxu2 %vm442_vm0, %v613_v46 }
 0x334   : > { %v610_v47 = vpop.f32.mrf.mxu1 }
 0x3b4   : > { %v646_v53 = vpop.f32.mrf.mxu2 }
 0x3b5   : > { %v647_v54 = vadd.f32 %v992_v52, %v646_v53 }
 0x3b7   : > { %v650_v55 = vmul.f32 %v647_v54, %v647_v54 }
 0x3b9   : > { %v651_v56 = vmul.f32 %v650_v55, %v647_v54 }
 0x3bb   : > { %v652_v57 = vmul.f32 0.044715, %v651_v56 }
 0x3bc   : > { %v648_v58 = vpop.f32.mrf.mxu2 }
 0x3bd   : > { %v653_v59 = vadd.f32 %v652_v57, %v647_v54 }
 0x3bf   : > { %v654_v60 = vmul.f32 0.7978846, %v653_v59 }
 0x3c1   : > { %998 = vtanh.f32 %v654_v60 }
 0x3c2   : > { %1000 = vrcp.f32 %v741_v11 }
 0x3c7   : > { %v999_v61 = vpop.eup %998 }
 0x3c8   : > { %v656_v62 = vadd.f32 1.0, %v999_v61  ;;  %v1001_v12 = vpop.eup %1000 }
 0x3ca   : > { %v657_v63 = vmul.f32 0.5, %v656_v62 }
 0x3cc   : > { %v658_v0 = vmul.f32 %v657_v63, %v647_v54 }
 0x3ce   : > { %v659_v1 = vpack.c.bf16 %v658_v0, %v658_v0 }
 0x3d0   : > { %924 = vmatmul.msk.bf16.vlgmr.msrb.gmra.mxu3 %vm696_vm3, %v659_v1 }
 0x453   : > { %v709_v4 = vpop.f32.mrf.mxu3 }
 0x454   : > { %v710_v5 = vadd.f32 %v993_v3, %v709_v4 }
 0x456   : > { %v713_v6 = vadd.f32 %v710_v5, %v612_v45 }
 0x458   : > { %732 = vmatpush.msra.mxu0 %v713_v6 }
 0x459   : > { %925 = vmatmul.msk.f32.vlgmr.msra.gmra.mxu0 %vm545_vm1, %v1214_v15  ;;  %v749_v15 = vld [vmem:[%s1309_s11] sm:$0x1] }
 0x45b   : > { %v711_v7 = vpop.f32.mrf.mxu3 }
 0x4d6   : > { %v734_v13 = vpop.f32.mrf.mxu0 }
 0x4d7   : > { %v743_v14 = vmul.f32 %v1001_v12, %v734_v13 }
 0x4d9   : > { %v744_v16 = vpack.c.bf16 %v743_v14, %v743_v14 }
 0x4db   : > { %934 = vmatmul.msk.bf16.vlgmr.msra.gmra.mxu1 %vm442_vm0, %v744_v16 }
 0x558   : > { %v774_v17 = vpop.f32.mrf.mxu1 }
 0x559   : > { %v775_v18 = vadd.f32 %v774_v17, %v749_v15 }
 0x55b   : > { %778 = vst [vmem:[%s414_s19] sm:$0x1] %v775_v18 }
 0x55c   : > { %1029 = shalt.err (!%p1026_p3)
}
 0x55d   : > { %953 = dma.vmem_to_hbm [thread:$0]  (%p1169_p5), %s791_s20, 16, %s793_s26, %s780_s28  }
 0x560   : > { %v776_v19 = vpop.f32.mrf.mxu1 }
 0x561 PF: > { %p959_p4 = scmp.ge.s32.totalorder %s1064_s24, 2  ;;  %s804_s15 = sand.u32 1, %s1052_s21  }
 0x562   : > { %s805_s30 = scalar_lea.sflag [#allocation3], %s804_s15 }
 0x563   : > { %p956_p7 = pnand %p959_p4, %p1173_p6 }
 0x565   : > { %p957_p8 = pneg %p956_p7 }
 0x567   : > { %1047 = dma.done.wait (%p957_p8), %s805_s30, 16  }
 0x568   : > { %1049 = vsyncadd (%p957_p8), %s805_s30, 4294967280  ;;  %s1318_s0 = sld [smem:[#allocation5_spill]]  ;;  %p22_p9 = scmp.ge.s32.totalorder %s1156_s27, 4  }
 0x569   : > { %s1319_s23 = sld [smem:[#allocation6_spill]]  ;;  %s1320_s21 = smov %s1056_s22 }
 0x56a   : > { %s1322_s24 = smov %s1156_s27  ;;  %24 = sbr.rel (!%p22_p9) target bundleno = 5 (0x5), region = 106 }
 0x56e   : > { %s1321_s22 = smov %s1318_s0 }
 0x56f   :  { %810 = vsyncpa [#allocation3], 1 }
 0x570   :  { %812 = vsyncpa [#allocation3 + $0x1], 1 }

</bundles_post_ra>
